<compile_context>
chip_gen: v7x
topology: tpu7x:2x2x1
jax: 0.10.0
libtpu: 0.0.40
codegen_flags: <defaults>
</compile_context>

<pallas_src>
import functools

import jax
import jax.numpy as jnp
from jax import lax
from jax.experimental import pallas as pl
from jax.experimental.pallas import tpu as pltpu

LANES = 128
SUBLANES = 8
MAX_BLOCK_ROWS = 4096   # 4096 * 128 * 4 B = 2 MiB per f32 stream per buffer
NUM_PARALLEL = 2        # shards the outer grid axis across TensorCores on v7x


def _elementwise_loss(x, t, w0, w1, label_smoothing):
    """Per-element weighted BCE-with-logits in f32 (shared by kernel/tail/ref)."""
    x = x.astype(jnp.float32)
    t = t.astype(jnp.float32)
    # wt = weights.gather(0, targets.long())   (targets in {0, 1})
    wt = jnp.where(t >= 0.5, jnp.float32(w1), jnp.float32(w0))
    if label_smoothing > 0.0:
        # t*(1-ls) + (1-t)*ls  ==  t*(1-2*ls) + ls  -> one mul+add, constants
        t = t * jnp.float32(1.0 - 2.0 * label_smoothing) + jnp.float32(label_smoothing)
    # numerically stable BCE-with-logits: max(x,0) - x*t + log1p(exp(-|x|))
    # TODO(synk): a bf16 softplus path would relieve the single EUP slot on
    # v6e/v7x if it ever binds; kept in f32 for exact parity with the reference.
    ce = jnp.maximum(x, 0.0) - x * t + jnp.log1p(jnp.exp(-jnp.abs(x)))
    return wt * ce


def _bce_kernel(logits_ref, targets_ref, out_ref, *, w0, w1, label_smoothing,
                valid_rows, block_rows, blocks_per_p, mask_from, needs_mask):
    p = pl.program_id(0)
    i = pl.program_id(1)

    @pl.when(i == 0)
    def _():
        out_ref[...] = jnp.zeros_like(out_ref)

    # DMA'd in native dtype; upcast to f32 on the VPU inside _elementwise_loss.
    loss = _elementwise_loss(logits_ref[...], targets_ref[...],
                             w0, w1, label_smoothing)

    def _accumulate(l):
        # Reduce only over the grouped-row axis (pure VPU vreg adds); the tiny
        # cross-lane reduce of the (P*8, 128) partials is deferred to XLA.
        out_ref[...] += jnp.sum(
            l.reshape(block_rows // SUBLANES, SUBLANES, LANES), axis=0)

    if needs_mask:
        blk = p * blocks_per_p + i

        # Interior blocks: no mask at all.
        @pl.when(blk < mask_from)
        def _():
            _accumulate(loss)

        # Edge block(s): row-level validity mask.  Also covers grid
        # over-coverage blocks, whose clamped re-fetch must contribute 0.
        # jnp.where is a select, so garbage data in the overhang cannot
        # poison the sum (zero-padded/garbage tail elements are NOT zero-loss).
        @pl.when(blk >= mask_from)
        def _():
            rows = blk * block_rows + lax.broadcasted_iota(
                jnp.int32, loss.shape, 0)
            _accumulate(jnp.where(rows < valid_rows, loss, 0.0))
    else:
        _accumulate(loss)


def _compute_weights(weights):
    """Replicates the torch weight normalization with Python floats."""
    if weights is None:
        return 1.0, 1.0
    if isinstance(weights, float):
        w = [1.0 - weights, weights]
    else:
        w = [float(weights[0]), float(weights[1])]
    inv = [1.0 / w[0], 1.0 / w[1]]
    denom = w[0] * inv[0] + w[1] * inv[1]
    return inv[0] / denom, inv[1] / denom


def binary_ce_loss(logits, targets, *, weights=None, label_smoothing=0.0,
                   reduction="mean"):
    if reduction not in ("mean", "sum"):
        # TODO(synk): reduction='none' (elementwise output) not implemented.
        raise NotImplementedError("only 'mean' and 'sum' reductions supported")

    w0, w1 = _compute_weights(weights)
    label_smoothing = float(label_smoothing)
    n_elems = int(logits.size)

    flat_l = jnp.ravel(logits)
    flat_t = jnp.ravel(targets)

    full_rows = n_elems // LANES
    rem = n_elems - full_rows * LANES

    # <=127-element tail handled with plain jnp (no full-array jnp.pad copy).
    tail = jnp.float32(0.0)
    if rem:
        # TODO(synk): the prefix/tail slices may still materialize copies in
        # XLA; only hit when the element count is not a multiple of 128.
        cut = full_rows * LANES
        tail = jnp.sum(_elementwise_loss(flat_l[cut:], flat_t[cut:],
                                         w0, w1, label_smoothing))
        flat_l = flat_l[:cut]
        flat_t = flat_t[:cut]

    main = jnp.float32(0.0)
    if full_rows > 0:
        main_l = flat_l.reshape(full_rows, LANES)
        main_t = flat_t.reshape(full_rows, LANES)

        # Tile sizing: large row blocks for bandwidth, shrunk for small inputs.
        rows_per_p = pl.cdiv(full_rows, NUM_PARALLEL)
        block_rows = min(MAX_BLOCK_ROWS,
                         max(SUBLANES, pl.cdiv(rows_per_p, SUBLANES) * SUBLANES))
        total_blocks = pl.cdiv(full_rows, block_rows)
        blocks_per_p = pl.cdiv(total_blocks, NUM_PARALLEL)

        last_partial = (full_rows % block_rows) != 0
        overcoverage = blocks_per_p * NUM_PARALLEL > total_blocks
        needs_mask = last_partial or overcoverage
        mask_from = total_blocks - 1 if last_partial else total_blocks

        def in_index_map(p, i):
            # Clamp so every fetched block starts in-bounds; clamped
            # out-of-range (p, i) combinations are fully masked in-kernel.
            return (jnp.minimum(p * blocks_per_p + i, total_blocks - 1), 0)

        tile_spec = pl.BlockSpec((block_rows, LANES), in_index_map)

        kernel = functools.partial(
            _bce_kernel, w0=w0, w1=w1, label_smoothing=label_smoothing,
            valid_rows=full_rows, block_rows=block_rows,
            blocks_per_p=blocks_per_p, mask_from=mask_from,
            needs_mask=needs_mask)

        # Explicit VMEM budget: double-buffered native-dtype inputs plus room
        # for the f32 elementwise-chain temporaries; safe for v7x (64 MiB
        # physical / 32 MiB scoped) and generous on v5e/v6e (128 MiB).
        block_elems = block_rows * LANES
        in_itemsize = (jnp.dtype(logits.dtype).itemsize
                       + jnp.dtype(targets.dtype).itemsize)
        vmem_limit = int(2 * block_elems * in_itemsize   # 2x double-buffered inputs
                         + 10 * block_elems * 4          # f32 temporaries
                         + (2 << 20))                    # headroom
        vmem_limit = min(max(vmem_limit, 8 << 20), 48 << 20)

        main_elems = full_rows * LANES
        cost = pl.CostEstimate(
            flops=16 * main_elems,
            transcendentals=2 * main_elems,
            bytes_accessed=main_elems * in_itemsize
            + NUM_PARALLEL * SUBLANES * LANES * 4)

        # TODO(synk): on v7x verify the size-2 "parallel" axis really shards
        # across both TensorCores; if not, switch it to pltpu.CORE_PARALLEL.
        partials = pl.pallas_call(
            kernel,
            out_shape=jax.ShapeDtypeStruct((NUM_PARALLEL * SUBLANES, LANES),
                                           jnp.float32),
            grid_spec=pltpu.PrefetchScalarGridSpec(
                num_scalar_prefetch=0,
                grid=(NUM_PARALLEL, blocks_per_p),
                in_specs=[tile_spec, tile_spec],
                out_specs=pl.BlockSpec((SUBLANES, LANES), lambda p, i: (p, 0)),
            ),
            compiler_params=pltpu.CompilerParams(
                dimension_semantics=("parallel", "arbitrary"),
                vmem_limit_bytes=vmem_limit),
            cost_estimate=cost,
        )(main_l, main_t)

        main = jnp.sum(partials)

    total = main + tail
    if reduction == "mean":
        total = total / jnp.float32(n_elems)
    return total


def _reference(logits, targets, *, weights=None, label_smoothing=0.0,
               reduction="mean"):
    w0, w1 = _compute_weights(weights)
    loss = _elementwise_loss(logits, targets, w0, w1, float(label_smoothing))
    return loss.mean() if reduction == "mean" else loss.sum()


if __name__ == "__main__":
    key = jax.random.PRNGKey(0)
    k1, k2, k3, k4 = jax.random.split(key, 4)

    weights = 0.3            # positive-class prior (float branch of __init__)
    label_smoothing = 0.1

    # Case 1: small NCHW-like shape (multiple of 128 -> mask-free fast path).
    shape = (2, 4, 16, 16)
    logits = jax.random.normal(k1, shape, dtype=jnp.float32)
    targets = jax.random.bernoulli(k2, 0.3, shape).astype(jnp.float32)

    loss_fn = jax.jit(functools.partial(
        binary_ce_loss, weights=weights, label_smoothing=label_smoothing,
        reduction="mean"))
    out = jax.block_until_ready(loss_fn(logits, targets))
    ref = _reference(logits, targets, weights=weights,
                     label_smoothing=label_smoothing, reduction="mean")
    assert jnp.allclose(out, ref, rtol=1e-5, atol=1e-6), (out, ref)

    # Case 2: non-multiple-of-128 element count exercises the edge-block mask
    # and the plain-jnp tail path ('sum' reduction).
    shape2 = (2, 3, 100)
    logits2 = jax.random.normal(k3, shape2, dtype=jnp.float32)
    targets2 = jax.random.bernoulli(k4, 0.5, shape2).astype(jnp.float32)
    out2 = jax.block_until_ready(jax.jit(functools.partial(
        binary_ce_loss, weights=weights, label_smoothing=label_smoothing,
        reduction="sum"))(logits2, targets2))
    ref2 = _reference(logits2, targets2, weights=weights,
                      label_smoothing=label_smoothing, reduction="sum")
    assert jnp.allclose(out2, ref2, rtol=1e-5, atol=1e-4), (out2, ref2)

    print("KERNEL_OK")
</pallas_src>

<mosaic_0001>
module attributes {stable_mosaic.version = 11 : i64} {
  func.func @_bce_kernel(%arg0: i32, %arg1: i32, %arg2: memref<8x128xf32, #tpu.memory_space<vmem>>, %arg3: memref<8x128xf32, #tpu.memory_space<vmem>>, %arg4: memref<8x128xf32, #tpu.memory_space<vmem>>) attributes {dimension_semantics = [#tpu.dimension_semantics<parallel>, #tpu.dimension_semantics<arbitrary>], iteration_bounds = array<i64: 2, 1>, scalar_prefetch = 0 : i64, scratch_operands = 0 : i64, tpu.core_type = #tpu.core_type<tc>, window_params = [{transform_indices = @transform_0, window_bounds = array<i64: 8, 128>}, {transform_indices = @transform_1, window_bounds = array<i64: 8, 128>}, {transform_indices = @transform_2, window_bounds = array<i64: 8, 128>}]} {
    %c0_i32 = arith.constant 0 : i32
    %0 = arith.cmpi eq, %arg1, %c0_i32 : i32
    %1 = arith.extui %0 : i1 to i32
    %c0_i32_0 = arith.constant 0 : i32
    %2 = arith.cmpi ne, %1, %c0_i32_0 : i32
    scf.if %2 {
      %cst_15 = arith.constant 0.000000e+00 : f32
      %30 = vector.broadcast %cst_15 : f32 to vector<8x128xf32>
      %c0_16 = arith.constant 0 : index
      %c0_17 = arith.constant 0 : index
      %31 = vector.load %arg4[%c0_16, %c0_17] : memref<8x128xf32, #tpu.memory_space<vmem>>, vector<8x128xf32>
      tpu.vector_store %arg4[%c0_16, %c0_17], %30 {strides = array<i32>} : memref<8x128xf32, #tpu.memory_space<vmem>>, vector<8x128xf32>,
    } else {
    }
    %c0 = arith.constant 0 : index
    %c0_1 = arith.constant 0 : index
    %3 = vector.load %arg2[%c0, %c0_1] : memref<8x128xf32, #tpu.memory_space<vmem>>, vector<8x128xf32>
    %c0_2 = arith.constant 0 : index
    %c0_3 = arith.constant 0 : index
    %4 = vector.load %arg3[%c0_2, %c0_3] : memref<8x128xf32, #tpu.memory_space<vmem>>, vector<8x128xf32>
    %cst = arith.constant 5.000000e-01 : f32
    %5 = vector.broadcast %cst : f32 to vector<8x128xf32>
    %6 = arith.cmpf oge, %4, %5 : vector<8x128xf32>
    %cst_4 = arith.constant 1.66666663 : f32
    %cst_5 = arith.constant 0.714285731 : f32
    %7 = vector.broadcast %cst_4 : f32 to vector<8x128xf32>
    %8 = vector.broadcast %cst_5 : f32 to vector<8x128xf32>
    %9 = arith.select %6, %7, %8 : vector<8x128xi1>, vector<8x128xf32>
    %cst_6 = arith.constant 8.000000e-01 : f32
    %10 = vector.broadcast %cst_6 : f32 to vector<8x128xf32>
    %11 = arith.mulf %4, %10 : vector<8x128xf32>
    %cst_7 = arith.constant 1.000000e-01 : f32
    %12 = vector.broadcast %cst_7 : f32 to vector<8x128xf32>
    %13 = arith.addf %11, %12 : vector<8x128xf32>
    %cst_8 = arith.constant 0.000000e+00 : f32
    %14 = vector.broadcast %cst_8 : f32 to vector<8x128xf32>
    %15 = arith.maximumf %3, %14 : vector<8x128xf32>
    %16 = arith.mulf %3, %13 : vector<8x128xf32>
    %17 = arith.subf %15, %16 : vector<8x128xf32>
    %18 = math.absf %3 : vector<8x128xf32>
    %cst_9 = arith.constant 0.000000e+00 : f32
    %19 = vector.broadcast %cst_9 : f32 to vector<8x128xf32>
    %20 = arith.subf %19, %18 : vector<8x128xf32>
    %21 = math.exp %20 : vector<8x128xf32>
    %22 = math.log1p %21 : vector<8x128xf32>
    %23 = arith.addf %17, %22 : vector<8x128xf32>
    %24 = arith.mulf %9, %23 : vector<8x128xf32>
    %c0_10 = arith.constant 0 : index
    %c0_11 = arith.constant 0 : index
    %25 = vector.load %arg4[%c0_10, %c0_11] : memref<8x128xf32, #tpu.memory_space<vmem>>, vector<8x128xf32>
    %26 = vector.shape_cast %24 : vector<8x128xf32> to vector<1x8x128xf32>
    %cst_12 = arith.constant dense<0.000000e+00> : vector<8x128xf32>
    %27 = vector.multi_reduction <add>, %26, %cst_12 [0] : vector<1x8x128xf32> to vector<8x128xf32>
    %28 = arith.addf %25, %27 : vector<8x128xf32>
    %c0_13 = arith.constant 0 : index
    %c0_14 = arith.constant 0 : index
    %29 = vector.load %arg4[%c0_13, %c0_14] : memref<8x128xf32, #tpu.memory_space<vmem>>, vector<8x128xf32>
    tpu.vector_store %arg4[%c0_13, %c0_14], %28 {strides = array<i32>} : memref<8x128xf32, #tpu.memory_space<vmem>>, vector<8x128xf32>,
    return
  }
  func.func @transform_0(%arg0: i32, %arg1: i32) -> (i32, i32) {
    %c1_i32 = arith.constant 1 : i32
    %0 = arith.muli %arg0, %c1_i32 : i32
    %1 = arith.addi %0, %arg1 : i32
    %c1_i32_0 = arith.constant 1 : i32
    %2 = arith.minsi %1, %c1_i32_0 : i32
    %c0_i32 = arith.constant 0 : i32
    %c0_i32_1 = arith.constant 0 : i32
    return %2, %c0_i32 : i32, i32
  }
  func.func @transform_1(%arg0: i32, %arg1: i32) -> (i32, i32) {
    %c1_i32 = arith.constant 1 : i32
    %0 = arith.muli %arg0, %c1_i32 : i32
    %1 = arith.addi %0, %arg1 : i32
    %c1_i32_0 = arith.constant 1 : i32
    %2 = arith.minsi %1, %c1_i32_0 : i32
    %c0_i32 = arith.constant 0 : i32
    %c0_i32_1 = arith.constant 0 : i32
    return %2, %c0_i32 : i32, i32
  }
  func.func @transform_2(%arg0: i32, %arg1: i32) -> (i32, i32) {
    %c0_i32 = arith.constant 0 : i32
    %c0_i32_0 = arith.constant 0 : i32
    return %arg0, %c0_i32 : i32, i32
  }
}

</mosaic_0001>

<bundles_post_ra>
// kernel: binary_ce_loss.1
= control target key start
LH: loop header
LB: loop body
LE: loop exit
PB: predicated region body
PF: predicated region fallthrough
CT: control target
= control target key end

     0   :  { %s402_s9 = smov 0   ;;  %s404_s10 = smov 0   ;;  %s442_s0 = inlined_call_operand.vmem [shape: f32[16,128], index: 0, kind: input, shape index: {}]   ;;  %s443_s1 = inlined_call_operand.vmem [shape: f32[16,128], index: 1, kind: input, shape index: {}]   ;;  %s444_s2 = inlined_call_operand.vmem [shape: f32[16,128], index: 2, kind: output, shape index: {}]  }
   0x1   :  { %s406_s11 = smov 0  }
   0x2 LB: > { %s24_s12 = sadd.s32 1, %s380_s10  ;;  %p320_p0 = scmp.ge.s32.totalorder %s384_s11, 1  ;;  %s384_s11 = sphi %s406_s11, %s12_s11   ;;  %s380_s10 = sphi %s404_s10, %s446_s10   ;;  %s376_s9 = sphi %s402_s9, %s445_s9  }
   0x3   : > { %p26_p1 = scmp.ge.s32.totalorder %s24_s12, 2  ;;  %p156_p2 = scmp.lt.s32.totalorder %s384_s11, 3 }
   0x5   : > { %s448_s12 = smov (%p26_p1, %s24_s12), 0  ;;  %p157_p3 = pnand %p320_p0, %p156_p2 }
   0x6   : > { %p187_p4 = scmp.lt.s32.totalorder (!%p157_p3), %s376_s9, 1  ;;  %v386_v18 = vmov (!%p157_p3), 0.71428573  }
   0x7   : > { %160 = sbr.rel (%p157_p3) target bundleno = 58 (0x3a), region = 28 }
   0xe   : > { %s450_s9 = smov (!%p187_p4, %s376_s9), 1 }
   0xf   : > { %s190_s13 = scalar_select %p187_p4, %s450_s9, 1 }
  0x10   : > { %s329_s21 = sshll.u32 %s450_s9, 3 }
  0x11   : > { %s324_s14 = sshll.u32 %s190_s13, 3  ;;  %s209_s24 = scalar_lea.vmem %s444_s2, %s329_s21 }
  0x12   : > { %s192_s17 = scalar_lea.vmem %s442_s0, %s324_s14  ;;  %s202_s20 = scalar_lea.vmem %s443_s1, %s324_s14 }
  0x13   : > { %v215_v0 = vld [vmem:[%s192_s17] sm:$0xff] }
  0x14   : > { %v224_v1 = vand.u32 2147483647, %v215_v0  ;;  %v216_v4 = vld [vmem:[%s202_s20] sm:$0xff]  ;;  %v221_v11 = vmax.f32 %v215_v0, 0.0 }
  0x15   : > { %v219_v6 = vmul.f32 0.8, %v216_v4  ;;  %vm217_vm0 = vcmp.ge.f32.partialorder %v216_v4, 0.5 }
  0x16   : > { %v225_v2 = vsub.f32 0.0, %v224_v1  ;;  %v218_v19 = vsel %vm217_vm0, 1.6666666, %v386_v18 }
  0x17   : > { %v220_v9 = vadd.f32 0.1, %v219_v6 }
  0x18   : > { %v226_v3 = vmul.f32 1.442695, %v225_v2 }
  0x19   : > { %v222_v12 = vmul.f32 %v220_v9, %v215_v0 }
  0x1a   : > { %358 = vpow2.f32 %v226_v3 }
  0x1b   : > { %v223_v16 = vsub.f32 %v221_v11, %v222_v12 }
  0x24   : > { %v359_v5 = vpop.eup %358 }
  0x25   : > { %v228_v7 = vadd.f32 1.0, %v359_v5  ;;  %v231_v8 = vmul.f32 -0.5, %v359_v5  ;;  %v234_v13 = vand.u32 2147483647, %v359_v5 }
  0x27   : > { %360 = vlog2.f32 %v228_v7  ;;  %v232_v10 = vadd.f32 1.0, %v231_v8  ;;  %vm235_vm1 = vcmp.lt.f32.partialorder %v234_v13, 0.0004427343 }
  0x29   : > { %v233_v14 = vmul.f32 %v359_v5, %v232_v10 }
  0x31   : > { %v361_v15 = vpop.eup %360 }
  0x32   : > { %v230_v17 = vmul.f32 0.6931472, %v361_v15 }
  0x34   : > { %v236_v20 = vsel %vm235_vm1, %v233_v14, %v230_v17 }
  0x35   : > { %v237_v21 = vadd.f32 %v236_v20, %v223_v16 }
  0x37   : > { %v238_v22 = vmul.f32 %v237_v21, %v218_v19 }
  0x39   : > { %242 = vst [vmem:[%s209_s24] sm:$0xff] %v238_v22 }
  0x3a PF: > { %s12_s11 = sadd.s32 1, %s384_s11   ;;  %s445_s9 = smov %s380_s10 }
  0x3b   : > { %p9_p5 = scmp.ge.s32.totalorder %s12_s11, 4   ;;  %s446_s10 = smov %s448_s12 }
  0x3d   :  { %11 = sbr.rel (!%p9_p5) target bundleno = 2 (0x2), region = 65 }

</bundles_post_ra>
